<compile_context>
chip_gen: v5e
topology: v5e:2x2
jax: 0.10.0
libtpu: 0.0.40
codegen_flags: <defaults>
</compile_context>

<pallas_src>
import functools

import jax
import jax.numpy as jnp
from jax.experimental import pallas as pl
from jax.experimental.pallas import tpu as pltpu

# ---------------- configuration (small, consistent with the module) ----------
NUM_IN_FEATS = 4
NUM_OUT_FEATS = 4
LOOKBACK = 16
HORIZON = 8
NUM_H_FEATS = 32
DEPTH = 2          # torch forward applies layers[0:2] + layers[-1]
STACK_SIZE = 4
BATCH = 2

IN_STEPS = NUM_IN_FEATS * LOOKBACK      # 64  (num_in_steps  = backcast size)
OUT_STEPS = NUM_OUT_FEATS * HORIZON     # 32  (num_out_steps = forecast size)
TOTAL = IN_STEPS + OUT_STEPS            # 96  (final Linear output width)

# Packed-bias lane layout: [ b1 (0:32) | b2f (32:64) | b2b (64:128) ]
_B1_LO, _B1_HI = 0, NUM_H_FEATS
_B2F_LO, _B2F_HI = NUM_H_FEATS, NUM_H_FEATS + OUT_STEPS
_B2B_LO, _B2B_HI = NUM_H_FEATS + OUT_STEPS, NUM_H_FEATS + OUT_STEPS + IN_STEPS


# ---------------- Pallas kernel ----------------------------------------------
def nbeats_kernel(x_ref, mask_ref, w1_ref, w2b_ref, w2f_ref, b_ref, out_ref):
    # Load inputs once; carry residual features / forecast sum as values.
    # The flip is already folded into the weights, so x/mask arrive in their
    # natural reshape(B, -1) layout.
    feats = x_ref[...]                                   # (Bp, IN_STEPS)
    mask = mask_ref[...]                                 # (Bp, IN_STEPS)
    preds = jnp.zeros((feats.shape[0], OUT_STEPS), jnp.float32)

    # Unrolled loop over the stack (all weights resident in VMEM).
    for s in range(STACK_SIZE):
        b = b_ref[s]                                     # (1, 128) packed biases
        b1 = b[:, _B1_LO:_B1_HI]                         # (1, H)
        b2f = b[:, _B2F_LO:_B2F_HI]                      # (1, OUT_STEPS)
        b2b = b[:, _B2B_LO:_B2B_HI]                      # (1, IN_STEPS)

        # Block: Linear(IN_STEPS, H) -> ReLU -> Linear(H, IN_STEPS + OUT_STEPS)
        h = jnp.dot(feats, w1_ref[s],
                    preferred_element_type=jnp.float32) + b1
        h = jnp.maximum(h, 0.0)
        # Final Linear split into lane-aligned backcast / forecast halves.
        backcast = jnp.dot(h, w2b_ref[s],
                           preferred_element_type=jnp.float32) + b2b
        forecast = jnp.dot(h, w2f_ref[s],
                           preferred_element_type=jnp.float32) + b2f
        # NBeats stack update.
        feats = (feats - backcast) * mask
        preds = preds + forecast

    out_ref[...] = preds


# ---------------- one-time parameter preparation ------------------------------
def prepare_params(params):
    """Fold the feature flip into the weights and pre-split/pack everything.

    Returns (w1', w2b', w2f, b_packed); done ONCE, outside the forward path.
    """
    w1, b1, w2, b2 = params
    # Flip folded into weights: kernel works on unflipped flat features.
    w1p = w1[:, ::-1, :]                                    # (S, IN, H)
    w2b = w2[:, :, :IN_STEPS][:, :, ::-1]                   # (S, H, IN) flipped out-axis
    w2f = w2[:, :, IN_STEPS:]                               # (S, H, OUT)
    b2b = b2[:, :, :IN_STEPS][:, :, ::-1]                   # (S, 1, IN)
    b2f = b2[:, :, IN_STEPS:]                               # (S, 1, OUT)
    # Pack biases lane-dense into a single (S, 1, 128) operand.
    b_packed = jnp.concatenate([b1, b2f, b2b], axis=-1)     # (S, 1, 128)
    return (jnp.asarray(w1p), jnp.asarray(w2b), jnp.asarray(w2f),
            jnp.asarray(b_packed))


# ---------------- wrapper (jitted: single dispatch) ----------------------------
@functools.partial(jax.jit, donate_argnums=())
def nbeats_forward(X, X_mask, w1, w2b, w2f, b_packed):
    """X, X_mask: (B, LOOKBACK, NUM_IN_FEATS) f32 -> (B, HORIZON, NUM_OUT_FEATS)."""
    B = X.shape[0]
    x = X.reshape(B, -1).astype(jnp.float32)
    m = X_mask.reshape(B, -1).astype(jnp.float32)

    # Pad the batch (sublane) dim to a multiple of 8 so vregs are fully usable.
    Bp = ((B + 7) // 8) * 8
    if Bp != B:
        pad = ((0, Bp - B), (0, 0))
        x = jnp.pad(x, pad)
        m = jnp.pad(m, pad)

    vmem = pl.BlockSpec(memory_space=pltpu.MemorySpace.VMEM)
    out = pl.pallas_call(
        nbeats_kernel,
        out_shape=jax.ShapeDtypeStruct((Bp, OUT_STEPS), jnp.float32),
        in_specs=[vmem] * 6,
        out_specs=vmem,
    )(x, m, w1, w2b, w2f, b_packed)

    return out[:B].reshape(B, HORIZON, NUM_OUT_FEATS)


# ---------------- pure-JAX reference (for correctness check) ------------------
def nbeats_reference(X, X_mask, params):
    w1, b1, w2, b2 = params
    B = X.shape[0]
    feats = X.reshape(B, -1)[:, ::-1]
    m = X_mask.reshape(B, -1)[:, ::-1]
    preds = jnp.zeros((B, 1), jnp.float32)       # torch.zeros_like(X[:, -1:])
    for s in range(STACK_SIZE):
        h = jnp.maximum(feats @ w1[s] + b1[s, 0], 0.0)
        theta = h @ w2[s] + b2[s, 0]
        back = theta[:, :IN_STEPS]
        fore = theta[:, -OUT_STEPS:]
        feats = (feats - back) * m
        preds = preds + fore
    return preds.reshape(B, HORIZON, NUM_OUT_FEATS)


# ---------------- deterministic parameter init --------------------------------
def init_params(key):
    k1, k2, k3, k4 = jax.random.split(key, 4)
    scale1 = 1.0 / jnp.sqrt(IN_STEPS)
    scale2 = 1.0 / jnp.sqrt(NUM_H_FEATS)
    w1 = jax.random.uniform(k1, (STACK_SIZE, IN_STEPS, NUM_H_FEATS),
                            jnp.float32, -scale1, scale1)
    b1 = jax.random.uniform(k2, (STACK_SIZE, 1, NUM_H_FEATS),
                            jnp.float32, -scale1, scale1)
    w2 = jax.random.uniform(k3, (STACK_SIZE, NUM_H_FEATS, TOTAL),
                            jnp.float32, -scale2, scale2)
    b2 = jax.random.uniform(k4, (STACK_SIZE, 1, TOTAL),
                            jnp.float32, -scale2, scale2)
    return w1, b1, w2, b2


if __name__ == "__main__":
    key = jax.random.PRNGKey(0)
    kp, kx, km = jax.random.split(key, 3)

    raw_params = init_params(kp)
    prepared = jax.block_until_ready(prepare_params(raw_params))  # one-time prep

    X = jax.random.normal(kx, (BATCH, LOOKBACK, NUM_IN_FEATS), jnp.float32)
    X_mask = (jax.random.uniform(km, (BATCH, LOOKBACK, NUM_IN_FEATS)) > 0.2
              ).astype(jnp.float32)

    out = nbeats_forward(X, X_mask, *prepared)
    out = jax.block_until_ready(out)

    ref = nbeats_reference(X, X_mask, raw_params)
    assert out.shape == (BATCH, HORIZON, NUM_OUT_FEATS)
    assert jnp.allclose(out, ref, rtol=1e-4, atol=1e-4), (
        f"max abs diff {jnp.max(jnp.abs(out - ref))}")

    print("KERNEL_OK")
</pallas_src>

<mosaic_0001>
module attributes {stable_mosaic.version = 11 : i64} {
  func.func @nbeats_kernel(%arg0: memref<8x64xf32, #tpu.memory_space<vmem>>, %arg1: memref<8x64xf32, #tpu.memory_space<vmem>>, %arg2: memref<4x64x32xf32, #tpu.memory_space<vmem>>, %arg3: memref<4x32x64xf32, #tpu.memory_space<vmem>>, %arg4: memref<4x32x32xf32, #tpu.memory_space<vmem>>, %arg5: memref<4x1x128xf32, #tpu.memory_space<vmem>>, %arg6: memref<8x32xf32, #tpu.memory_space<vmem>>) attributes {dimension_semantics = [], scalar_prefetch = 0 : i64, scratch_operands = 0 : i64, tpu.core_type = #tpu.core_type<tc>} {
    %c0 = arith.constant 0 : index
    %c0_0 = arith.constant 0 : index
    %0 = vector.load %arg0[%c0, %c0_0] : memref<8x64xf32, #tpu.memory_space<vmem>>, vector<8x64xf32>
    %c0_1 = arith.constant 0 : index
    %c0_2 = arith.constant 0 : index
    %1 = vector.load %arg1[%c0_1, %c0_2] : memref<8x64xf32, #tpu.memory_space<vmem>>, vector<8x64xf32>
    %cst = arith.constant 0.000000e+00 : f32
    %2 = vector.broadcast %cst : f32 to vector<8x32xf32>
    %c0_3 = arith.constant 0 : index
    %c0_4 = arith.constant 0 : index
    %c0_5 = arith.constant 0 : index
    %3 = vector.load %arg5[%c0_3, %c0_4, %c0_5] : memref<4x1x128xf32, #tpu.memory_space<vmem>>, vector<1x1x128xf32>
    %4 = vector.shape_cast %3 : vector<1x1x128xf32> to vector<1x128xf32>
    %5 = vector.extract_strided_slice %4 {offsets = [0, 0], sizes = [1, 32], strides = [1, 1]} : vector<1x128xf32> to vector<1x32xf32>
    %6 = vector.extract_strided_slice %4 {offsets = [0, 32], sizes = [1, 32], strides = [1, 1]} : vector<1x128xf32> to vector<1x32xf32>
    %7 = vector.extract_strided_slice %4 {offsets = [0, 64], sizes = [1, 64], strides = [1, 1]} : vector<1x128xf32> to vector<1x64xf32>
    %c0_6 = arith.constant 0 : index
    %c0_7 = arith.constant 0 : index
    %c0_8 = arith.constant 0 : index
    %8 = vector.load %arg2[%c0_6, %c0_7, %c0_8] : memref<4x64x32xf32, #tpu.memory_space<vmem>>, vector<1x64x32xf32>
    %9 = vector.shape_cast %8 : vector<1x64x32xf32> to vector<64x32xf32>
    %cst_9 = arith.constant dense<0.000000e+00> : vector<8x32xf32>
    %10 = tpu.matmul %0, %9, %cst_9 {dimension_numbers = #tpu.dot_dimension_numbers<[1], [0], [0], [1], [0, 0, 1, 1], [], []>} : vector<8x64xf32>, vector<64x32xf32>, vector<8x32xf32> -> vector<8x32xf32>
    %11 = vector.broadcast %5 : vector<1x32xf32> to vector<8x32xf32>
    %12 = arith.addf %10, %11 : vector<8x32xf32>
    %cst_10 = arith.constant 0.000000e+00 : f32
    %13 = vector.broadcast %cst_10 : f32 to vector<8x32xf32>
    %14 = arith.maximumf %12, %13 : vector<8x32xf32>
    %c0_11 = arith.constant 0 : index
    %c0_12 = arith.constant 0 : index
    %c0_13 = arith.constant 0 : index
    %15 = vector.load %arg3[%c0_11, %c0_12, %c0_13] : memref<4x32x64xf32, #tpu.memory_space<vmem>>, vector<1x32x64xf32>
    %16 = vector.shape_cast %15 : vector<1x32x64xf32> to vector<32x64xf32>
    %cst_14 = arith.constant dense<0.000000e+00> : vector<8x64xf32>
    %17 = tpu.matmul %14, %16, %cst_14 {dimension_numbers = #tpu.dot_dimension_numbers<[1], [0], [0], [1], [0, 0, 1, 1], [], []>} : vector<8x32xf32>, vector<32x64xf32>, vector<8x64xf32> -> vector<8x64xf32>
    %18 = vector.broadcast %7 : vector<1x64xf32> to vector<8x64xf32>
    %19 = arith.addf %17, %18 : vector<8x64xf32>
    %c0_15 = arith.constant 0 : index
    %c0_16 = arith.constant 0 : index
    %c0_17 = arith.constant 0 : index
    %20 = vector.load %arg4[%c0_15, %c0_16, %c0_17] : memref<4x32x32xf32, #tpu.memory_space<vmem>>, vector<1x32x32xf32>
    %21 = vector.shape_cast %20 : vector<1x32x32xf32> to vector<32x32xf32>
    %cst_18 = arith.constant dense<0.000000e+00> : vector<8x32xf32>
    %22 = tpu.matmul %14, %21, %cst_18 {dimension_numbers = #tpu.dot_dimension_numbers<[1], [0], [0], [1], [0, 0, 1, 1], [], []>} : vector<8x32xf32>, vector<32x32xf32>, vector<8x32xf32> -> vector<8x32xf32>
    %23 = vector.broadcast %6 : vector<1x32xf32> to vector<8x32xf32>
    %24 = arith.addf %22, %23 : vector<8x32xf32>
    %25 = arith.subf %0, %19 : vector<8x64xf32>
    %26 = arith.mulf %25, %1 : vector<8x64xf32>
    %27 = arith.addf %2, %24 : vector<8x32xf32>
    %c1 = arith.constant 1 : index
    %c0_19 = arith.constant 0 : index
    %c0_20 = arith.constant 0 : index
    %28 = vector.load %arg5[%c1, %c0_19, %c0_20] : memref<4x1x128xf32, #tpu.memory_space<vmem>>, vector<1x1x128xf32>
    %29 = vector.shape_cast %28 : vector<1x1x128xf32> to vector<1x128xf32>
    %30 = vector.extract_strided_slice %29 {offsets = [0, 0], sizes = [1, 32], strides = [1, 1]} : vector<1x128xf32> to vector<1x32xf32>
    %31 = vector.extract_strided_slice %29 {offsets = [0, 32], sizes = [1, 32], strides = [1, 1]} : vector<1x128xf32> to vector<1x32xf32>
    %32 = vector.extract_strided_slice %29 {offsets = [0, 64], sizes = [1, 64], strides = [1, 1]} : vector<1x128xf32> to vector<1x64xf32>
    %c1_21 = arith.constant 1 : index
    %c0_22 = arith.constant 0 : index
    %c0_23 = arith.constant 0 : index
    %33 = vector.load %arg2[%c1_21, %c0_22, %c0_23] : memref<4x64x32xf32, #tpu.memory_space<vmem>>, vector<1x64x32xf32>
    %34 = vector.shape_cast %33 : vector<1x64x32xf32> to vector<64x32xf32>
    %cst_24 = arith.constant dense<0.000000e+00> : vector<8x32xf32>
    %35 = tpu.matmul %26, %34, %cst_24 {dimension_numbers = #tpu.dot_dimension_numbers<[1], [0], [0], [1], [0, 0, 1, 1], [], []>} : vector<8x64xf32>, vector<64x32xf32>, vector<8x32xf32> -> vector<8x32xf32>
    %36 = vector.broadcast %30 : vector<1x32xf32> to vector<8x32xf32>
    %37 = arith.addf %35, %36 : vector<8x32xf32>
    %cst_25 = arith.constant 0.000000e+00 : f32
    %38 = vector.broadcast %cst_25 : f32 to vector<8x32xf32>
    %39 = arith.maximumf %37, %38 : vector<8x32xf32>
    %c1_26 = arith.constant 1 : index
    %c0_27 = arith.constant 0 : index
    %c0_28 = arith.constant 0 : index
    %40 = vector.load %arg3[%c1_26, %c0_27, %c0_28] : memref<4x32x64xf32, #tpu.memory_space<vmem>>, vector<1x32x64xf32>
    %41 = vector.shape_cast %40 : vector<1x32x64xf32> to vector<32x64xf32>
    %cst_29 = arith.constant dense<0.000000e+00> : vector<8x64xf32>
    %42 = tpu.matmul %39, %41, %cst_29 {dimension_numbers = #tpu.dot_dimension_numbers<[1], [0], [0], [1], [0, 0, 1, 1], [], []>} : vector<8x32xf32>, vector<32x64xf32>, vector<8x64xf32> -> vector<8x64xf32>
    %43 = vector.broadcast %32 : vector<1x64xf32> to vector<8x64xf32>
    %44 = arith.addf %42, %43 : vector<8x64xf32>
    %c1_30 = arith.constant 1 : index
    %c0_31 = arith.constant 0 : index
    %c0_32 = arith.constant 0 : index
    %45 = vector.load %arg4[%c1_30, %c0_31, %c0_32] : memref<4x32x32xf32, #tpu.memory_space<vmem>>, vector<1x32x32xf32>
    %46 = vector.shape_cast %45 : vector<1x32x32xf32> to vector<32x32xf32>
    %cst_33 = arith.constant dense<0.000000e+00> : vector<8x32xf32>
    %47 = tpu.matmul %39, %46, %cst_33 {dimension_numbers = #tpu.dot_dimension_numbers<[1], [0], [0], [1], [0, 0, 1, 1], [], []>} : vector<8x32xf32>, vector<32x32xf32>, vector<8x32xf32> -> vector<8x32xf32>
    %48 = vector.broadcast %31 : vector<1x32xf32> to vector<8x32xf32>
    %49 = arith.addf %47, %48 : vector<8x32xf32>
    %50 = arith.subf %26, %44 : vector<8x64xf32>
    %51 = arith.mulf %50, %1 : vector<8x64xf32>
    %52 = arith.addf %27, %49 : vector<8x32xf32>
    %c2 = arith.constant 2 : index
    %c0_34 = arith.constant 0 : index
    %c0_35 = arith.constant 0 : index
    %53 = vector.load %arg5[%c2, %c0_34, %c0_35] : memref<4x1x128xf32, #tpu.memory_space<vmem>>, vector<1x1x128xf32>
    %54 = vector.shape_cast %53 : vector<1x1x128xf32> to vector<1x128xf32>
    %55 = vector.extract_strided_slice %54 {offsets = [0, 0], sizes = [1, 32], strides = [1, 1]} : vector<1x128xf32> to vector<1x32xf32>
    %56 = vector.extract_strided_slice %54 {offsets = [0, 32], sizes = [1, 32], strides = [1, 1]} : vector<1x128xf32> to vector<1x32xf32>
    %57 = vector.extract_strided_slice %54 {offsets = [0, 64], sizes = [1, 64], strides = [1, 1]} : vector<1x128xf32> to vector<1x64xf32>
    %c2_36 = arith.constant 2 : index
    %c0_37 = arith.constant 0 : index
    %c0_38 = arith.constant 0 : index
    %58 = vector.load %arg2[%c2_36, %c0_37, %c0_38] : memref<4x64x32xf32, #tpu.memory_space<vmem>>, vector<1x64x32xf32>
    %59 = vector.shape_cast %58 : vector<1x64x32xf32> to vector<64x32xf32>
    %cst_39 = arith.constant dense<0.000000e+00> : vector<8x32xf32>
    %60 = tpu.matmul %51, %59, %cst_39 {dimension_numbers = #tpu.dot_dimension_numbers<[1], [0], [0], [1], [0, 0, 1, 1], [], []>} : vector<8x64xf32>, vector<64x32xf32>, vector<8x32xf32> -> vector<8x32xf32>
    %61 = vector.broadcast %55 : vector<1x32xf32> to vector<8x32xf32>
    %62 = arith.addf %60, %61 : vector<8x32xf32>
    %cst_40 = arith.constant 0.000000e+00 : f32
    %63 = vector.broadcast %cst_40 : f32 to vector<8x32xf32>
    %64 = arith.maximumf %62, %63 : vector<8x32xf32>
    %c2_41 = arith.constant 2 : index
    %c0_42 = arith.constant 0 : index
    %c0_43 = arith.constant 0 : index
    %65 = vector.load %arg3[%c2_41, %c0_42, %c0_43] : memref<4x32x64xf32, #tpu.memory_space<vmem>>, vector<1x32x64xf32>
    %66 = vector.shape_cast %65 : vector<1x32x64xf32> to vector<32x64xf32>
    %cst_44 = arith.constant dense<0.000000e+00> : vector<8x64xf32>
    %67 = tpu.matmul %64, %66, %cst_44 {dimension_numbers = #tpu.dot_dimension_numbers<[1], [0], [0], [1], [0, 0, 1, 1], [], []>} : vector<8x32xf32>, vector<32x64xf32>, vector<8x64xf32> -> vector<8x64xf32>
    %68 = vector.broadcast %57 : vector<1x64xf32> to vector<8x64xf32>
    %69 = arith.addf %67, %68 : vector<8x64xf32>
    %c2_45 = arith.constant 2 : index
    %c0_46 = arith.constant 0 : index
    %c0_47 = arith.constant 0 : index
    %70 = vector.load %arg4[%c2_45, %c0_46, %c0_47] : memref<4x32x32xf32, #tpu.memory_space<vmem>>, vector<1x32x32xf32>
    %71 = vector.shape_cast %70 : vector<1x32x32xf32> to vector<32x32xf32>
    %cst_48 = arith.constant dense<0.000000e+00> : vector<8x32xf32>
    %72 = tpu.matmul %64, %71, %cst_48 {dimension_numbers = #tpu.dot_dimension_numbers<[1], [0], [0], [1], [0, 0, 1, 1], [], []>} : vector<8x32xf32>, vector<32x32xf32>, vector<8x32xf32> -> vector<8x32xf32>
    %73 = vector.broadcast %56 : vector<1x32xf32> to vector<8x32xf32>
    %74 = arith.addf %72, %73 : vector<8x32xf32>
    %75 = arith.subf %51, %69 : vector<8x64xf32>
    %76 = arith.mulf %75, %1 : vector<8x64xf32>
    %77 = arith.addf %52, %74 : vector<8x32xf32>
    %c3 = arith.constant 3 : index
    %c0_49 = arith.constant 0 : index
    %c0_50 = arith.constant 0 : index
    %78 = vector.load %arg5[%c3, %c0_49, %c0_50] : memref<4x1x128xf32, #tpu.memory_space<vmem>>, vector<1x1x128xf32>
    %79 = vector.shape_cast %78 : vector<1x1x128xf32> to vector<1x128xf32>
    %80 = vector.extract_strided_slice %79 {offsets = [0, 0], sizes = [1, 32], strides = [1, 1]} : vector<1x128xf32> to vector<1x32xf32>
    %81 = vector.extract_strided_slice %79 {offsets = [0, 32], sizes = [1, 32], strides = [1, 1]} : vector<1x128xf32> to vector<1x32xf32>
    %c3_51 = arith.constant 3 : index
    %c0_52 = arith.constant 0 : index
    %c0_53 = arith.constant 0 : index
    %82 = vector.load %arg2[%c3_51, %c0_52, %c0_53] : memref<4x64x32xf32, #tpu.memory_space<vmem>>, vector<1x64x32xf32>
    %83 = vector.shape_cast %82 : vector<1x64x32xf32> to vector<64x32xf32>
    %cst_54 = arith.constant dense<0.000000e+00> : vector<8x32xf32>
    %84 = tpu.matmul %76, %83, %cst_54 {dimension_numbers = #tpu.dot_dimension_numbers<[1], [0], [0], [1], [0, 0, 1, 1], [], []>} : vector<8x64xf32>, vector<64x32xf32>, vector<8x32xf32> -> vector<8x32xf32>
    %85 = vector.broadcast %80 : vector<1x32xf32> to vector<8x32xf32>
    %86 = arith.addf %84, %85 : vector<8x32xf32>
    %cst_55 = arith.constant 0.000000e+00 : f32
    %87 = vector.broadcast %cst_55 : f32 to vector<8x32xf32>
    %88 = arith.maximumf %86, %87 : vector<8x32xf32>
    %c3_56 = arith.constant 3 : index
    %c0_57 = arith.constant 0 : index
    %c0_58 = arith.constant 0 : index
    %89 = vector.load %arg4[%c3_56, %c0_57, %c0_58] : memref<4x32x32xf32, #tpu.memory_space<vmem>>, vector<1x32x32xf32>
    %90 = vector.shape_cast %89 : vector<1x32x32xf32> to vector<32x32xf32>
    %cst_59 = arith.constant dense<0.000000e+00> : vector<8x32xf32>
    %91 = tpu.matmul %88, %90, %cst_59 {dimension_numbers = #tpu.dot_dimension_numbers<[1], [0], [0], [1], [0, 0, 1, 1], [], []>} : vector<8x32xf32>, vector<32x32xf32>, vector<8x32xf32> -> vector<8x32xf32>
    %92 = vector.broadcast %81 : vector<1x32xf32> to vector<8x32xf32>
    %93 = arith.addf %91, %92 : vector<8x32xf32>
    %94 = arith.addf %77, %93 : vector<8x32xf32>
    %c0_60 = arith.constant 0 : index
    %c0_61 = arith.constant 0 : index
    %95 = vector.load %arg6[%c0_60, %c0_61] : memref<8x32xf32, #tpu.memory_space<vmem>>, vector<8x32xf32>
    tpu.vector_store %arg6[%c0_60, %c0_61], %94 {strides = array<i32>} : memref<8x32xf32, #tpu.memory_space<vmem>>, vector<8x32xf32>,
    return
  }
}

</mosaic_0001>

<bundles_post_ra>
// kernel: nbeats_forward.1
= control target key start
LH: loop header
LB: loop body
LE: loop exit
PB: predicated region body
PF: predicated region fallthrough
CT: control target
= control target key end

     0   :  { %vm37_vm0 = vcmask 523264   ;;  %s462_s21 = smov 64   ;;  %s463_s17 = smov 96   ;;  %vm69_vm1 = vcmask 261120   ;;  %s729_s2 = inlined_call_operand.vmem [shape: f32[4,64,32], index: 2, kind: input, shape index: {}]   ;;  %s730_s3 = inlined_call_operand.vmem [shape: f32[4,32,64], index: 3, kind: input, shape index: {}]   ;;  %s731_s4 = inlined_call_operand.vmem [shape: f32[4,32,32], index: 4, kind: input, shape index: {}]   ;;  %s732_s5 = inlined_call_operand.vmem [shape: f32[4,1,128], index: 5, kind: input, shape index: {}]   ;;  %s733_s0 = inlined_call_operand.vmem [shape: f32[8,64], index: 0, kind: input, shape index: {}]   ;;  %s734_s1 = inlined_call_operand.vmem [shape: f32[8,64], index: 1, kind: input, shape index: {}]   ;;  %s735_s6 = inlined_call_operand.vmem [shape: f32[8,32], index: 6, kind: output, shape index: {}]  }
   0x1   :  { %v33_v0 = vld [vmem:[%s729_s2 + $0x38] sm:$0xff]  ;;  %v32_v1 = vld [vmem:[%s729_s2 + $0x30] sm:$0xff]  ;;  %v31_v2 = vld [vmem:[%s729_s2 + $0x28] sm:$0xff] }
   0x2   :  { %49 = vmatpush.msra.mxu0 %v33_v0  ;;  %v65_v3 = vld [vmem:[%s730_s3 + $0x18] sm:$0xff]  ;;  %v30_v5 = vld [vmem:[%s729_s2 + $0x20] sm:$0xff]  ;;  %v28_v7 = vld [vmem:[%s729_s2 + $0x10] sm:$0xff] }
   0x3   :  { %v96_v4 = vld [vmem:[%s731_s4 + $0x18] sm:$0xff]  ;;  %85 = vmatpush.msra.mxu1 %v65_v3  ;;  %v27_v8 = vld [vmem:[%s729_s2 + $0x8] sm:$0xff]  ;;  %v26_v9 = vld [vmem:[%s729_s2] sm:$0xff] }
   0x4   :  { %50 = vmatpush.msra.mxu0 %v32_v1  ;;  %112 = vmatpush.msra.mxu2 %v96_v4  ;;  %v29_v6 = vld [vmem:[%s729_s2 + $0x18] sm:$0xff]  ;;  %v23_v10 = vld [vmem:[%s733_s0] sm:$0xff]  ;;  %v64_v12 = vld [vmem:[%s730_s3 + $0x10] sm:$0xff] }
   0x5   :  { %v458_v11 = vld [vmem:[%s732_s5] ss:$0 sm:$0xff]  ;;  %v95_v13 = vld [vmem:[%s731_s4 + $0x10] sm:$0xff]  ;;  %86 = vmatpush.msra.mxu1 %v64_v12  ;;  %v63_v14 = vld [vmem:[%s730_s3 + $0x8] sm:$0xff] }
   0x6   :  { %51 = vmatpush.msra.mxu0 %v31_v2  ;;  %66 = vrot.lane.b32.xlu0 %v458_v11, %s462_s21  ;;  %v94_v15 = vld [vmem:[%s731_s4 + $0x8] sm:$0xff]  ;;  %v62_v16 = vld [vmem:[%s730_s3] sm:$0xff]  ;;  %v409_v19 = vld [vmem:[%s729_s2 + $0x78] sm:$0xff] }
   0x7   :  { %113 = vmatpush.msra.mxu2 %v95_v13  ;;  %87 = vmatpush.msra.mxu1 %v63_v14  ;;  %v93_v17 = vld [vmem:[%s731_s4] sm:$0xff]  ;;  %v408_v20 = vld [vmem:[%s729_s2 + $0x70] sm:$0xff]  ;;  %v407_v21 = vld [vmem:[%s729_s2 + $0x68] sm:$0xff] }
   0x8   :  { %52 = vmatpush.msra.mxu0 %v30_v5  ;;  %v558_v18 = vld [vmem:[%s732_s5 + $0x2] ss:$0 sm:$0xff]  ;;  %148 = vmatpush.msra.mxu3 %v409_v19  ;;  %v405_v26 = vld [vmem:[%s729_s2 + $0x58] sm:$0xff]  ;;  %v404_v27 = vld [vmem:[%s729_s2 + $0x50] sm:$0xff] }
   0x9   :  { %114 = vmatpush.msra.mxu2 %v94_v15  ;;  %88 = vmatpush.msra.mxu1 %v62_v16  ;;  %v406_v25 = vld [vmem:[%s729_s2 + $0x60] sm:$0xff]  ;;  %v403_v28 = vld [vmem:[%s729_s2 + $0x48] sm:$0xff]  ;;  %v414_v30 = vld [vmem:[%s730_s3 + $0x38] sm:$0xff] }
   0xa   :  { %53 = vmatpush.msra.mxu0 %v29_v6  ;;  %266 = vrot.lane.b32.xlu1 %v558_v18, %s462_s21  ;;  %v402_v29 = vld [vmem:[%s729_s2 + $0x40] sm:$0xff]  ;;  %v419_v31 = vld [vmem:[%s731_s4 + $0x38] sm:$0xff]  ;;  %v413_v32 = vld [vmem:[%s730_s3 + $0x30] sm:$0xff] }
   0xb   :  { %115 = vmatpush.msra.mxu2 %v93_v17  ;;  %149 = vmatpush.msra.mxu3 %v408_v20  ;;  %v460_v33 = vld [vmem:[%s732_s5 + $0x1] ss:$0 sm:$0xff]  ;;  %v418_v40 = vld [vmem:[%s731_s4 + $0x30] sm:$0xff]  ;;  %v412_v41 = vld [vmem:[%s730_s3 + $0x28] sm:$0xff] }
   0xc   :  { %54 = vmatpush.msra.mxu0 %v28_v7  ;;  %184 = vmatpush.msrb.mxu1 %v414_v30  ;;  %v608_v37 = vld [vmem:[%s734_s1] sm:$0xff]  ;;  %v417_v42 = vld [vmem:[%s731_s4 + $0x28] sm:$0xff]  ;;  %v429_v45 = vld [vmem:[%s729_s2 + $0xb8] sm:$0xff] }
   0xd   :  { %150 = vmatpush.msra.mxu3 %v407_v21  ;;  %212 = vmatpush.msrb.mxu2 %v419_v31  ;;  %v411_v43 = vld [vmem:[%s730_s3 + $0x20] sm:$0xff]  ;;  %v428_v46 = vld [vmem:[%s729_s2 + $0xb0] sm:$0xff]  ;;  %v427_v47 = vld [vmem:[%s729_s2 + $0xa8] sm:$0xff] }
   0xe   :  { %55 = vmatpush.msra.mxu0 %v27_v8  ;;  %185 = vmatpush.msrb.mxu1 %v413_v32  ;;  %v416_v44 = vld [vmem:[%s731_s4 + $0x20] sm:$0xff]  ;;  %v425_v52 = vld [vmem:[%s729_s2 + $0x98] sm:$0xff]  ;;  %v424_v53 = vld [vmem:[%s729_s2 + $0x90] sm:$0xff] }
   0xf   :  { %151 = vmatpush.msra.mxu3 %v406_v25  ;;  %166 = vrot.lane.b32.xlu0 %v460_v33, %s462_s21  ;;  %v426_v48 = vld [vmem:[%s729_s2 + $0xa0] sm:$0xff]  ;;  %v423_v54 = vld [vmem:[%s729_s2 + $0x88] sm:$0xff]  ;;  %v434_v56 = vld [vmem:[%s730_s3 + $0x58] sm:$0xff] }
  0x10   :  { %56 = vmatpush.msra.mxu0 %v26_v9  ;;  %197 = vrot.lane.b32.xlu2 %v460_v33, %s463_s17  ;;  %v422_v55 = vld [vmem:[%s729_s2 + $0x80] sm:$0xff]  ;;  %v439_v57 = vld [vmem:[%s731_s4 + $0x58] sm:$0xff]  ;;  %v433_v58 = vld [vmem:[%s730_s3 + $0x50] sm:$0xff] }
  0x11   :  { %398 = vmatmul.msk.f32.vlgmr.msra.gmra.mxu0 %vm37_vm0, %v23_v10  ;;  %152 = vmatpush.msra.mxu3 %v405_v26  ;;  %v438_v0 = vld [vmem:[%s731_s4 + $0x50] sm:$0xff]  ;;  %v432_v1 = vld [vmem:[%s730_s3 + $0x48] sm:$0xff]  ;;  %v431_v3 = vld [vmem:[%s730_s3 + $0x40] sm:$0xff] }
  0x12   :  { %97 = vrot.lane.b32.xlu1 %v458_v11, %s463_s17  ;;  %213 = vmatpush.msrb.mxu2 %v418_v40  ;;  %v437_v2 = vld [vmem:[%s731_s4 + $0x48] sm:$0xff]  ;;  %v436_v4 = vld [vmem:[%s731_s4 + $0x40] sm:$0xff]  ;;  %v449_v5 = vld [vmem:[%s729_s2 + $0xf8] sm:$0xff] }
  0x13   :  { %153 = vmatpush.msra.mxu3 %v404_v27  ;;  %186 = vmatpush.msrb.mxu1 %v412_v41  ;;  %v448_v6 = vld [vmem:[%s729_s2 + $0xf0] sm:$0xff]  ;;  %v447_v7 = vld [vmem:[%s729_s2 + $0xe8] sm:$0xff]  ;;  %v446_v8 = vld [vmem:[%s729_s2 + $0xe0] sm:$0xff] }
  0x14   :  { %214 = vmatpush.msrb.mxu2 %v417_v42  ;;  %248 = vmatpush.msrb.mxu0 %v429_v45  ;;  %v445_v12 = vld [vmem:[%s729_s2 + $0xd8] sm:$0xff]  ;;  %v444_v13 = vld [vmem:[%s729_s2 + $0xd0] sm:$0xff]  ;;  %v443_v14 = vld [vmem:[%s729_s2 + $0xc8] sm:$0xff] }
  0x15   :  { %154 = vmatpush.msra.mxu3 %v403_v28  ;;  %187 = vmatpush.msrb.mxu1 %v411_v43  ;;  %v442_v15 = vld [vmem:[%s729_s2 + $0xc0] sm:$0xff]  ;;  %v454_v16 = vld [vmem:[%s731_s4 + $0x78] sm:$0xff]  ;;  %v453_v17 = vld [vmem:[%s731_s4 + $0x70] sm:$0xff] }
  0x16   :  { %215 = vmatpush.msrb.mxu2 %v416_v44  ;;  %249 = vmatpush.msrb.mxu0 %v428_v46  ;;  %v451_v25 = vld [vmem:[%s731_s4 + $0x60] sm:$0xff] }
  0x17   :  { %155 = vmatpush.msra.mxu3 %v402_v29 }
  0x18   :  { %297 = vrot.lane.b32.xlu2 %v558_v18, %s463_s17  ;;  %250 = vmatpush.msrb.mxu0 %v427_v47 }
  0x19   :  { %348 = vmatpush.msrb.mxu3 %v449_v5 }
  0x1a   :  { %251 = vmatpush.msrb.mxu0 %v426_v48 }
  0x1b   :  { %349 = vmatpush.msrb.mxu3 %v448_v6 }
  0x1c   :  { %252 = vmatpush.msrb.mxu0 %v425_v52 }
  0x1d   :  { %350 = vmatpush.msrb.mxu3 %v447_v7 }
  0x1e   :  { %253 = vmatpush.msrb.mxu0 %v424_v53 }
  0x1f   :  { %351 = vmatpush.msrb.mxu3 %v446_v8 }
  0x20   :  { %254 = vmatpush.msrb.mxu0 %v423_v54 }
  0x21   :  { %352 = vmatpush.msrb.mxu3 %v445_v12 }
  0x22   :  { %255 = vmatpush.msrb.mxu0 %v422_v55 }
  0x23   :  { %353 = vmatpush.msrb.mxu3 %v444_v13 }
  0x25   :  { %354 = vmatpush.msrb.mxu3 %v443_v14 }
  0x27   :  { %355 = vmatpush.msrb.mxu3 %v442_v15 }
  0x6a   :  { %v198_v30 = vpop.permute.xlu2 %197 }
  0x78   :  { %v67_v34 = vpop.permute.xlu0 %66 }
  0x7c   :  { %v267_v19 = vpop.permute.xlu1 %266 }
  0x81   :  { %v167_v59 = vpop.permute.xlu0 %166 }
  0x84   :  { %v98_v32 = vpop.permute.xlu1 %97 }
  0x8e   :  { %v58_v22 = vpop.f32.mrf.mxu0 }
  0x8f   :  { %v59_v23 = vadd.f32 %v458_v11, %v58_v22 }
  0x91   :  { %v61_v24 = vmax.f32 %v59_v23, 0.0 }
  0x93   :  { %399 = vmatmul.msk.f32.vlgmr.msra.gmra.mxu1 %vm69_vm1, %v61_v24  ;;  %400 = vmatmul.msk.f32.vlgmr.msra.gmra.mxu2 %vm69_vm1, %v61_v24  ;;  %v452_v24 = vld [vmem:[%s731_s4 + $0x68] sm:$0xff] }
  0x94   :  { %284 = vmatpush.msra.mxu1 %v434_v56  ;;  %312 = vmatpush.msra.mxu2 %v439_v57 }
  0x96   :  { %285 = vmatpush.msra.mxu1 %v433_v58  ;;  %313 = vmatpush.msra.mxu2 %v438_v0 }
  0x98   :  { %286 = vmatpush.msra.mxu1 %v432_v1  ;;  %314 = vmatpush.msra.mxu2 %v437_v2 }
  0x9a   :  { %287 = vmatpush.msra.mxu1 %v431_v3  ;;  %315 = vmatpush.msra.mxu2 %v436_v4 }
 0x110   :  { %v90_v35 = vpop.f32.mrf.mxu1 }
 0x111   :  { %v91_v36 = vadd.f32 %v90_v35, %v67_v34 }
 0x113   :  { %v120_v38 = vsub.f32 %v23_v10, %v91_v36 }
 0x115   :  { %v121_v39 = vmul.f32 %v120_v38, %v608_v37 }
 0x116   :  { %v117_v29 = vpop.f32.mrf.mxu2 }
 0x117   :  { %410 = vmatmul.msk.f32.vlgmr.msra.gmra.mxu3 %vm37_vm0, %v121_v39  ;;  %v118_v36 = vadd.f32 %v117_v29, %v98_v32 }
 0x19a   :  { %v157_v49 = vpop.f32.mrf.mxu3 }
 0x19b   :  { %v158_v50 = vadd.f32 %v460_v33, %v157_v49  ;;  %v298_v33 = vpop.permute.xlu2 %297 }
 0x19d   :  { %v160_v51 = vmax.f32 %v158_v50, 0.0 }
 0x19f   :  { %415 = vmatmul.msk.f32.vlgmr.msrb.gmra.mxu1 %vm69_vm1, %v160_v51  ;;  %420 = vmatmul.msk.f32.vlgmr.msrb.gmra.mxu2 %vm69_vm1, %v160_v51 }
 0x1a0   :  { %384 = vmatpush.msrb.mxu1 %v454_v16 }
 0x1a2   :  { %385 = vmatpush.msrb.mxu1 %v453_v17 }
 0x1a4   :  { %386 = vmatpush.msrb.mxu1 %v452_v24 }
 0x1a6   :  { %387 = vmatpush.msrb.mxu1 %v451_v25 }
 0x21c   :  { %v189_v60 = vpop.f32.mrf.mxu1 }
 0x21d   :  { %v190_v61 = vadd.f32 %v189_v60, %v167_v59 }
 0x21f   :  { %v220_v62 = vsub.f32 %v121_v39, %v190_v61 }
 0x221   :  { %v221_v63 = vmul.f32 %v220_v62, %v608_v37 }
 0x222   :  { %v217_v31 = vpop.f32.mrf.mxu2 }
 0x223   :  { %430 = vmatmul.msk.f32.vlgmr.msrb.gmra.mxu0 %vm37_vm0, %v221_v63  ;;  %v218_v35 = vadd.f32 %v217_v31, %v198_v30 }
 0x225   :  { %v222_v39 = vadd.f32 %v218_v35, %v118_v36 }
 0x2a0   :  { %v257_v9 = vpop.f32.mrf.mxu0 }
 0x2a1   :  { %v258_v10 = vadd.f32 %v558_v18, %v257_v9  ;;  %v461_v18 = vld [vmem:[%s732_s5 + $0x3] ss:$0 sm:$0xff] }
 0x2a2   :  { %366 = vrot.lane.b32.xlu0 %v461_v18, %s463_s17 }
 0x2a3   :  { %v260_v11 = vmax.f32 %v258_v10, 0.0 }
 0x2a5   :  { %435 = vmatmul.msk.f32.vlgmr.msra.gmra.mxu1 %vm69_vm1, %v260_v11  ;;  %440 = vmatmul.msk.f32.vlgmr.msra.gmra.mxu2 %vm69_vm1, %v260_v11 }
 0x314   :  { %v367_v38 = vpop.permute.xlu0 %366 }
 0x322   :  { %v289_v20 = vpop.f32.mrf.mxu1 }
 0x323   :  { %v290_v21 = vadd.f32 %v289_v20, %v267_v19 }
 0x325   :  { %v320_v22 = vsub.f32 %v221_v63, %v290_v21 }
 0x327   :  { %v321_v23 = vmul.f32 %v320_v22, %v608_v37 }
 0x328   :  { %v317_v34 = vpop.f32.mrf.mxu2 }
 0x329   :  { %450 = vmatmul.msk.f32.vlgmr.msrb.gmra.mxu3 %vm37_vm0, %v321_v23  ;;  %v318_v37 = vadd.f32 %v317_v34, %v298_v33 }
 0x32b   :  { %v322_v41 = vadd.f32 %v318_v37, %v222_v39 }
 0x3ac   :  { %v357_v26 = vpop.f32.mrf.mxu3 }
 0x3ad   :  { %v358_v27 = vadd.f32 %v461_v18, %v357_v26 }
 0x3af   :  { %v360_v28 = vmax.f32 %v358_v27, 0.0 }
 0x3b1   :  { %455 = vmatmul.msk.f32.vlgmr.msrb.gmra.mxu1 %vm69_vm1, %v360_v28 }
 0x42e   :  { %v389_v40 = vpop.f32.mrf.mxu1 }
 0x42f   :  { %v390_v42 = vadd.f32 %v389_v40, %v367_v38 }
 0x431   :  { %v392_v43 = vadd.f32 %v390_v42, %v322_v41 }
 0x433   :  { %393 = vst.msk [vmem:[%s735_s6] sm:$0xff] %vm69_vm1, %v392_v43 }

</bundles_post_ra>
